<compile_context>
chip_gen: v5e
topology: v5e:2x2
jax: 0.10.0
libtpu: 0.0.40
codegen_flags: <defaults>
</compile_context>

<pallas_src>
import functools
import math

import jax
import jax.numpy as jnp
from jax.experimental import pallas as pl
from jax.experimental.pallas import tpu as pltpu


# --------------------------------------------------------------------------------------
# Kernel 1: build the (H, I, J) bias table (batch independent, off the hot path).
# --------------------------------------------------------------------------------------
def _bias_rows_kernel(embt_ref, bias_ref, *, causal, num_buckets, max_distance,
                      rows_per_block, j_size):
    """For a block of `rows_per_block` query rows compute
    bias[h, r, j] = emb[bucket(q_r, k_j), h] via a one-hot matmul per row (MXU gather)."""
    r0 = pl.program_id(0) * rows_per_block

    # Relative-position buckets for the whole (rows, J) block — 2-D iotas, no div/mod.
    q_pos = r0 + jax.lax.broadcasted_iota(jnp.int32, (rows_per_block, j_size), 0)
    k_pos = jax.lax.broadcasted_iota(jnp.int32, (rows_per_block, j_size), 1)
    n = q_pos - k_pos                          # == -(k - q), as in the torch module

    nb = num_buckets
    ret = jnp.zeros_like(n)
    if causal:
        nb = nb // 2
        ret = (n < 0).astype(jnp.int32) * nb
        n = jnp.abs(n)
    else:
        n = jnp.maximum(n, 0)
    max_exact = nb // 2
    is_small = n < max_exact
    # clamp log argument to >= 1: the small branch is selected there anyway (matches torch)
    nf = jnp.maximum(n, 1).astype(jnp.float32)
    val_if_large = max_exact + (
        jnp.log(nf / max_exact) / math.log(max_distance / max_exact)
        * (nb - max_exact)).astype(jnp.int32)          # trunc toward zero == torch .long()
    val_if_large = jnp.minimum(val_if_large, nb - 1)
    bucket = ret + jnp.where(is_small, n, val_if_large)    # (rows, J) int32

    emb_t = embt_ref[...]                                  # (H, num_buckets) f32
    b_idx = jax.lax.broadcasted_iota(jnp.int32, (num_buckets, j_size), 0)

    # TODO(synk): bucket depends only on (q - k); a diagonal (Toeplitz) factorization
    # would shrink this gather ~J-fold, but the per-row one-hot matmul is already
    # batch-independent and off the hot path, so it is kept for lowering simplicity.
    for r in range(rows_per_block):                        # static unroll (<= 8 rows)
        onehot = (b_idx == bucket[r:r + 1, :]).astype(jnp.float32)        # (nb, J)
        row = jnp.dot(emb_t, onehot, preferred_element_type=jnp.float32)  # (H, J)
        bias_ref[:, r, :] = row


# --------------------------------------------------------------------------------------
# Kernel 2: the hot path — tiled broadcast add (pure HBM-roofline work).
# --------------------------------------------------------------------------------------
def _add_bias_kernel(bias_ref, qk_ref, out_ref):
    # bias block: (H, TI, J) f32; qk/out block: (1, H, TI, J) in qk dtype.
    out_ref[...] = (qk_ref[...] + bias_ref[...][None]).astype(out_ref.dtype)


def _pick_row_tile(i_size, heads, j_size, itemsize, target_bytes=1 << 20):
    """Largest multiple-of-8 query-row tile whose (1, H, TI, J) block is ~target_bytes.
    ~1 MiB blocks keep 3 arrays x 2 buffers well under the scoped-VMEM default on all
    of v5e / v6e / v7x while staying near the HBM roofline."""
    if i_size <= 8:
        return i_size
    ti = target_bytes // max(1, heads * j_size * itemsize)
    if ti >= i_size:
        return i_size
    return max(8, int(ti) // 8 * 8)


def relative_position_bias(qk_dots, emb, *, causal=False, num_buckets=128,
                           max_distance=128):
    """qk_dots: (B, H, I, J); emb: (num_buckets, H) embedding weight.
    Returns qk_dots + bias, matching RelativePositionBias.forward.
    (The torch forward uses the staticmethod's default max_distance=128; pass 128 here
    for exact parity with the module defaults.)"""
    B, H, I, J = qk_dots.shape
    emb_t = jnp.asarray(emb, jnp.float32).T                  # (H, num_buckets)

    # ---- 1) bias table (H, I, J), computed once (independent of batch) --------------
    rows_pb = I if I < 8 else 8
    builder = functools.partial(
        _bias_rows_kernel, causal=causal, num_buckets=num_buckets,
        max_distance=max_distance, rows_per_block=rows_pb, j_size=J)
    bias = pl.pallas_call(
        builder,
        out_shape=jax.ShapeDtypeStruct((H, I, J), jnp.float32),
        grid_spec=pltpu.PrefetchScalarGridSpec(
            num_scalar_prefetch=0,
            grid=(pl.cdiv(I, rows_pb),),
            in_specs=[pl.BlockSpec((H, num_buckets), lambda r: (0, 0))],
            out_specs=pl.BlockSpec((H, rows_pb, J), lambda r: (0, r, 0))),
        compiler_params=pltpu.CompilerParams(
            dimension_semantics=("parallel",),
            vmem_limit_bytes=32 * 1024 * 1024),
    )(emb_t)

    # ---- 2) tiled, mem-bound broadcast add over (B, H, I, J) ------------------------
    ti = _pick_row_tile(I, H, J, qk_dots.dtype.itemsize)
    out = pl.pallas_call(
        _add_bias_kernel,
        out_shape=jax.ShapeDtypeStruct((B, H, I, J), qk_dots.dtype),
        grid_spec=pltpu.PrefetchScalarGridSpec(
            num_scalar_prefetch=0,
            # B innermost: the bias block index is unchanged across B, so Pallas skips
            # re-fetching it and the bias tile stays resident in VMEM per i-tile.
            grid=(pl.cdiv(I, ti), B),
            in_specs=[pl.BlockSpec((H, ti, J), lambda it, b: (0, it, 0)),
                      pl.BlockSpec((1, H, ti, J), lambda it, b: (b, 0, it, 0))],
            out_specs=pl.BlockSpec((1, H, ti, J), lambda it, b: (b, 0, it, 0))),
        compiler_params=pltpu.CompilerParams(
            dimension_semantics=("parallel", "arbitrary"),
            vmem_limit_bytes=32 * 1024 * 1024),
        input_output_aliases={1: 0},   # output aliases qk: pure in-place add
    )(bias, qk_dots)
    return out


# --------------------------------------------------------------------------------------
# Pure-JAX replica of the PyTorch forward for validation.
# --------------------------------------------------------------------------------------
def _reference(qk_dots, emb, *, causal=False, num_buckets=128, max_distance=128):
    I, J = qk_dots.shape[-2:]
    q = jnp.arange(I, dtype=jnp.int32)[:, None]
    k = jnp.arange(J, dtype=jnp.int32)[None, :]
    n = -(k - q)
    nb = num_buckets
    ret = jnp.zeros((I, J), jnp.int32)
    if causal:
        nb //= 2
        ret = (n < 0).astype(jnp.int32) * nb
        n = jnp.abs(n)
    else:
        n = jnp.maximum(n, 0)
    max_exact = nb // 2
    is_small = n < max_exact
    val_if_large = max_exact + (
        jnp.log(jnp.maximum(n, 1).astype(jnp.float32) / max_exact)
        / math.log(max_distance / max_exact) * (nb - max_exact)).astype(jnp.int32)
    val_if_large = jnp.minimum(val_if_large, nb - 1)
    bucket = ret + jnp.where(is_small, n, val_if_large)
    values = emb[bucket]                                  # (I, J, H)
    bias = jnp.transpose(values, (2, 0, 1))[None]         # (1, H, I, J)
    return qk_dots + bias


if __name__ == "__main__":
    # Module config (defaults of RelativePositionBias)
    num_buckets = 128
    max_distance = 128
    heads = 8

    # Small deterministic example inputs
    B, H, I, J = 2, heads, 16, 16
    key = jax.random.PRNGKey(0)
    k_emb, k_qk = jax.random.split(key)
    emb = 0.02 * jax.random.normal(k_emb, (num_buckets, heads), jnp.float32)
    qk_dots = jax.random.normal(k_qk, (B, H, I, J), jnp.float32)

    for causal in (False, True):
        out = relative_position_bias(qk_dots, emb, causal=causal,
                                     num_buckets=num_buckets,
                                     max_distance=max_distance)
        out = jax.block_until_ready(out)
        ref = _reference(qk_dots, emb, causal=causal,
                         num_buckets=num_buckets, max_distance=max_distance)
        assert out.shape == (B, H, I, J)
        assert jnp.allclose(out, ref, atol=1e-5, rtol=1e-5), f"mismatch (causal={causal})"
    print("KERNEL_OK")
</pallas_src>

<mosaic_0001>
module attributes {stable_mosaic.version = 11 : i64} {
  func.func @_bias_rows_kernel(%arg0: i32, %arg1: memref<8x128xf32, #tpu.memory_space<vmem>>, %arg2: memref<8x8x16xf32, #tpu.memory_space<vmem>>) attributes {dimension_semantics = [#tpu.dimension_semantics<parallel>], iteration_bounds = array<i64: 2>, scalar_prefetch = 0 : i64, scratch_operands = 0 : i64, tpu.core_type = #tpu.core_type<tc>, window_params = [{pipeline_mode = #tpu.pipeline_mode<synchronous>, transform_indices = @transform_0, window_bounds = array<i64: 8, 128>}, {transform_indices = @transform_1, window_bounds = array<i64: 8, 8, 16>}]} {
    %c8_i32 = arith.constant 8 : i32
    %0 = arith.muli %arg0, %c8_i32 : i32
    %1 = tpu.iota {dimensions = array<i32: 0>} : vector<8x16xi32>
    %2 = vector.broadcast %0 : i32 to vector<8x16xi32>
    %3 = arith.addi %2, %1 : vector<8x16xi32>
    %4 = tpu.iota {dimensions = array<i32: 1>} : vector<8x16xi32>
    %5 = arith.subi %3, %4 : vector<8x16xi32>
    %c0_i32 = arith.constant 0 : i32
    %6 = vector.broadcast %c0_i32 : i32 to vector<8x16xi32>
    %c0_i32_0 = arith.constant 0 : i32
    %7 = vector.broadcast %c0_i32_0 : i32 to vector<8x16xi32>
    %8 = arith.maxsi %5, %7 : vector<8x16xi32>
    %c64_i32 = arith.constant 64 : i32
    %9 = vector.broadcast %c64_i32 : i32 to vector<8x16xi32>
    %10 = arith.cmpi slt, %8, %9 : vector<8x16xi32>
    %c1_i32 = arith.constant 1 : i32
    %11 = vector.broadcast %c1_i32 : i32 to vector<8x16xi32>
    %12 = arith.maxsi %8, %11 : vector<8x16xi32>
    %13 = arith.sitofp %12 : vector<8x16xi32> to vector<8x16xf32>
    %cst = arith.constant 6.400000e+01 : f32
    %14 = vector.broadcast %cst : f32 to vector<8x16xf32>
    %15 = arith.divf %13, %14 : vector<8x16xf32>
    %16 = math.log %15 : vector<8x16xf32>
    %cst_1 = arith.constant 0.693147182 : f32
    %17 = vector.broadcast %cst_1 : f32 to vector<8x16xf32>
    %18 = arith.divf %16, %17 : vector<8x16xf32>
    %cst_2 = arith.constant 6.400000e+01 : f32
    %19 = vector.broadcast %cst_2 : f32 to vector<8x16xf32>
    %20 = arith.mulf %18, %19 : vector<8x16xf32>
    %21 = arith.fptosi %20 : vector<8x16xf32> to vector<8x16xi32>
    %c64_i32_3 = arith.constant 64 : i32
    %22 = vector.broadcast %c64_i32_3 : i32 to vector<8x16xi32>
    %23 = arith.addi %22, %21 : vector<8x16xi32>
    %c127_i32 = arith.constant 127 : i32
    %24 = vector.broadcast %c127_i32 : i32 to vector<8x16xi32>
    %25 = arith.minsi %23, %24 : vector<8x16xi32>
    %26 = arith.select %10, %8, %25 : vector<8x16xi1>, vector<8x16xi32>
    %27 = arith.addi %6, %26 : vector<8x16xi32>
    %c0 = arith.constant 0 : index
    %c0_4 = arith.constant 0 : index
    %28 = vector.load %arg1[%c0, %c0_4] : memref<8x128xf32, #tpu.memory_space<vmem>>, vector<8x128xf32>
    %29 = tpu.iota {dimensions = array<i32: 0>} : vector<128x16xi32>
    %30 = vector.extract_strided_slice %27 {offsets = [0, 0], sizes = [1, 16], strides = [1, 1]} : vector<8x16xi32> to vector<1x16xi32>
    %31 = vector.broadcast %30 : vector<1x16xi32> to vector<128x16xi32>
    %32 = arith.cmpi eq, %29, %31 : vector<128x16xi32>
    %33 = arith.extui %32 : vector<128x16xi1> to vector<128x16xi32>
    %34 = arith.sitofp %33 : vector<128x16xi32> to vector<128x16xf32>
    %cst_5 = arith.constant dense<0.000000e+00> : vector<8x16xf32>
    %35 = tpu.matmul %28, %34, %cst_5 {dimension_numbers = #tpu.dot_dimension_numbers<[1], [0], [0], [1], [0, 0, 1, 1], [], []>} : vector<8x128xf32>, vector<128x16xf32>, vector<8x16xf32> -> vector<8x16xf32>
    %c0_6 = arith.constant 0 : index
    %c0_7 = arith.constant 0 : index
    %c0_8 = arith.constant 0 : index
    %36 = vector.load %arg2[%c0_6, %c0_7, %c0_8] : memref<8x8x16xf32, #tpu.memory_space<vmem>>, vector<8x1x16xf32>
    %37 = vector.shape_cast %36 : vector<8x1x16xf32> to vector<8x16xf32>
    %38 = vector.shape_cast %35 : vector<8x16xf32> to vector<8x1x16xf32>
    tpu.vector_store %arg2[%c0_6, %c0_7, %c0_8], %38 {strides = array<i32>} : memref<8x8x16xf32, #tpu.memory_space<vmem>>, vector<8x1x16xf32>,
    %39 = vector.extract_strided_slice %27 {offsets = [1, 0], sizes = [1, 16], strides = [1, 1]} : vector<8x16xi32> to vector<1x16xi32>
    %40 = vector.broadcast %39 : vector<1x16xi32> to vector<128x16xi32>
    %41 = arith.cmpi eq, %29, %40 : vector<128x16xi32>
    %42 = arith.extui %41 : vector<128x16xi1> to vector<128x16xi32>
    %43 = arith.sitofp %42 : vector<128x16xi32> to vector<128x16xf32>
    %cst_9 = arith.constant dense<0.000000e+00> : vector<8x16xf32>
    %44 = tpu.matmul %28, %43, %cst_9 {dimension_numbers = #tpu.dot_dimension_numbers<[1], [0], [0], [1], [0, 0, 1, 1], [], []>} : vector<8x128xf32>, vector<128x16xf32>, vector<8x16xf32> -> vector<8x16xf32>
    %c0_10 = arith.constant 0 : index
    %c1 = arith.constant 1 : index
    %c0_11 = arith.constant 0 : index
    %45 = vector.load %arg2[%c0_10, %c1, %c0_11] : memref<8x8x16xf32, #tpu.memory_space<vmem>>, vector<8x1x16xf32>
    %46 = vector.shape_cast %45 : vector<8x1x16xf32> to vector<8x16xf32>
    %47 = vector.shape_cast %44 : vector<8x16xf32> to vector<8x1x16xf32>
    tpu.vector_store %arg2[%c0_10, %c1, %c0_11], %47 {strides = array<i32>} : memref<8x8x16xf32, #tpu.memory_space<vmem>>, vector<8x1x16xf32>,
    %48 = vector.extract_strided_slice %27 {offsets = [2, 0], sizes = [1, 16], strides = [1, 1]} : vector<8x16xi32> to vector<1x16xi32>
    %49 = vector.broadcast %48 : vector<1x16xi32> to vector<128x16xi32>
    %50 = arith.cmpi eq, %29, %49 : vector<128x16xi32>
    %51 = arith.extui %50 : vector<128x16xi1> to vector<128x16xi32>
    %52 = arith.sitofp %51 : vector<128x16xi32> to vector<128x16xf32>
    %cst_12 = arith.constant dense<0.000000e+00> : vector<8x16xf32>
    %53 = tpu.matmul %28, %52, %cst_12 {dimension_numbers = #tpu.dot_dimension_numbers<[1], [0], [0], [1], [0, 0, 1, 1], [], []>} : vector<8x128xf32>, vector<128x16xf32>, vector<8x16xf32> -> vector<8x16xf32>
    %c0_13 = arith.constant 0 : index
    %c2 = arith.constant 2 : index
    %c0_14 = arith.constant 0 : index
    %54 = vector.load %arg2[%c0_13, %c2, %c0_14] : memref<8x8x16xf32, #tpu.memory_space<vmem>>, vector<8x1x16xf32>
    %55 = vector.shape_cast %54 : vector<8x1x16xf32> to vector<8x16xf32>
    %56 = vector.shape_cast %53 : vector<8x16xf32> to vector<8x1x16xf32>
    tpu.vector_store %arg2[%c0_13, %c2, %c0_14], %56 {strides = array<i32>} : memref<8x8x16xf32, #tpu.memory_space<vmem>>, vector<8x1x16xf32>,
    %57 = vector.extract_strided_slice %27 {offsets = [3, 0], sizes = [1, 16], strides = [1, 1]} : vector<8x16xi32> to vector<1x16xi32>
    %58 = vector.broadcast %57 : vector<1x16xi32> to vector<128x16xi32>
    %59 = arith.cmpi eq, %29, %58 : vector<128x16xi32>
    %60 = arith.extui %59 : vector<128x16xi1> to vector<128x16xi32>
    %61 = arith.sitofp %60 : vector<128x16xi32> to vector<128x16xf32>
    %cst_15 = arith.constant dense<0.000000e+00> : vector<8x16xf32>
    %62 = tpu.matmul %28, %61, %cst_15 {dimension_numbers = #tpu.dot_dimension_numbers<[1], [0], [0], [1], [0, 0, 1, 1], [], []>} : vector<8x128xf32>, vector<128x16xf32>, vector<8x16xf32> -> vector<8x16xf32>
    %c0_16 = arith.constant 0 : index
    %c3 = arith.constant 3 : index
    %c0_17 = arith.constant 0 : index
    %63 = vector.load %arg2[%c0_16, %c3, %c0_17] : memref<8x8x16xf32, #tpu.memory_space<vmem>>, vector<8x1x16xf32>
    %64 = vector.shape_cast %63 : vector<8x1x16xf32> to vector<8x16xf32>
    %65 = vector.shape_cast %62 : vector<8x16xf32> to vector<8x1x16xf32>
    tpu.vector_store %arg2[%c0_16, %c3, %c0_17], %65 {strides = array<i32>} : memref<8x8x16xf32, #tpu.memory_space<vmem>>, vector<8x1x16xf32>,
    %66 = vector.extract_strided_slice %27 {offsets = [4, 0], sizes = [1, 16], strides = [1, 1]} : vector<8x16xi32> to vector<1x16xi32>
    %67 = vector.broadcast %66 : vector<1x16xi32> to vector<128x16xi32>
    %68 = arith.cmpi eq, %29, %67 : vector<128x16xi32>
    %69 = arith.extui %68 : vector<128x16xi1> to vector<128x16xi32>
    %70 = arith.sitofp %69 : vector<128x16xi32> to vector<128x16xf32>
    %cst_18 = arith.constant dense<0.000000e+00> : vector<8x16xf32>
    %71 = tpu.matmul %28, %70, %cst_18 {dimension_numbers = #tpu.dot_dimension_numbers<[1], [0], [0], [1], [0, 0, 1, 1], [], []>} : vector<8x128xf32>, vector<128x16xf32>, vector<8x16xf32> -> vector<8x16xf32>
    %c0_19 = arith.constant 0 : index
    %c4 = arith.constant 4 : index
    %c0_20 = arith.constant 0 : index
    %72 = vector.load %arg2[%c0_19, %c4, %c0_20] : memref<8x8x16xf32, #tpu.memory_space<vmem>>, vector<8x1x16xf32>
    %73 = vector.shape_cast %72 : vector<8x1x16xf32> to vector<8x16xf32>
    %74 = vector.shape_cast %71 : vector<8x16xf32> to vector<8x1x16xf32>
    tpu.vector_store %arg2[%c0_19, %c4, %c0_20], %74 {strides = array<i32>} : memref<8x8x16xf32, #tpu.memory_space<vmem>>, vector<8x1x16xf32>,
    %75 = vector.extract_strided_slice %27 {offsets = [5, 0], sizes = [1, 16], strides = [1, 1]} : vector<8x16xi32> to vector<1x16xi32>
    %76 = vector.broadcast %75 : vector<1x16xi32> to vector<128x16xi32>
    %77 = arith.cmpi eq, %29, %76 : vector<128x16xi32>
    %78 = arith.extui %77 : vector<128x16xi1> to vector<128x16xi32>
    %79 = arith.sitofp %78 : vector<128x16xi32> to vector<128x16xf32>
    %cst_21 = arith.constant dense<0.000000e+00> : vector<8x16xf32>
    %80 = tpu.matmul %28, %79, %cst_21 {dimension_numbers = #tpu.dot_dimension_numbers<[1], [0], [0], [1], [0, 0, 1, 1], [], []>} : vector<8x128xf32>, vector<128x16xf32>, vector<8x16xf32> -> vector<8x16xf32>
    %c0_22 = arith.constant 0 : index
    %c5 = arith.constant 5 : index
    %c0_23 = arith.constant 0 : index
    %81 = vector.load %arg2[%c0_22, %c5, %c0_23] : memref<8x8x16xf32, #tpu.memory_space<vmem>>, vector<8x1x16xf32>
    %82 = vector.shape_cast %81 : vector<8x1x16xf32> to vector<8x16xf32>
    %83 = vector.shape_cast %80 : vector<8x16xf32> to vector<8x1x16xf32>
    tpu.vector_store %arg2[%c0_22, %c5, %c0_23], %83 {strides = array<i32>} : memref<8x8x16xf32, #tpu.memory_space<vmem>>, vector<8x1x16xf32>,
    %84 = vector.extract_strided_slice %27 {offsets = [6, 0], sizes = [1, 16], strides = [1, 1]} : vector<8x16xi32> to vector<1x16xi32>
    %85 = vector.broadcast %84 : vector<1x16xi32> to vector<128x16xi32>
    %86 = arith.cmpi eq, %29, %85 : vector<128x16xi32>
    %87 = arith.extui %86 : vector<128x16xi1> to vector<128x16xi32>
    %88 = arith.sitofp %87 : vector<128x16xi32> to vector<128x16xf32>
    %cst_24 = arith.constant dense<0.000000e+00> : vector<8x16xf32>
    %89 = tpu.matmul %28, %88, %cst_24 {dimension_numbers = #tpu.dot_dimension_numbers<[1], [0], [0], [1], [0, 0, 1, 1], [], []>} : vector<8x128xf32>, vector<128x16xf32>, vector<8x16xf32> -> vector<8x16xf32>
    %c0_25 = arith.constant 0 : index
    %c6 = arith.constant 6 : index
    %c0_26 = arith.constant 0 : index
    %90 = vector.load %arg2[%c0_25, %c6, %c0_26] : memref<8x8x16xf32, #tpu.memory_space<vmem>>, vector<8x1x16xf32>
    %91 = vector.shape_cast %90 : vector<8x1x16xf32> to vector<8x16xf32>
    %92 = vector.shape_cast %89 : vector<8x16xf32> to vector<8x1x16xf32>
    tpu.vector_store %arg2[%c0_25, %c6, %c0_26], %92 {strides = array<i32>} : memref<8x8x16xf32, #tpu.memory_space<vmem>>, vector<8x1x16xf32>,
    %93 = vector.extract_strided_slice %27 {offsets = [7, 0], sizes = [1, 16], strides = [1, 1]} : vector<8x16xi32> to vector<1x16xi32>
    %94 = vector.broadcast %93 : vector<1x16xi32> to vector<128x16xi32>
    %95 = arith.cmpi eq, %29, %94 : vector<128x16xi32>
    %96 = arith.extui %95 : vector<128x16xi1> to vector<128x16xi32>
    %97 = arith.sitofp %96 : vector<128x16xi32> to vector<128x16xf32>
    %cst_27 = arith.constant dense<0.000000e+00> : vector<8x16xf32>
    %98 = tpu.matmul %28, %97, %cst_27 {dimension_numbers = #tpu.dot_dimension_numbers<[1], [0], [0], [1], [0, 0, 1, 1], [], []>} : vector<8x128xf32>, vector<128x16xf32>, vector<8x16xf32> -> vector<8x16xf32>
    %c0_28 = arith.constant 0 : index
    %c7 = arith.constant 7 : index
    %c0_29 = arith.constant 0 : index
    %99 = vector.load %arg2[%c0_28, %c7, %c0_29] : memref<8x8x16xf32, #tpu.memory_space<vmem>>, vector<8x1x16xf32>
    %100 = vector.shape_cast %99 : vector<8x1x16xf32> to vector<8x16xf32>
    %101 = vector.shape_cast %98 : vector<8x16xf32> to vector<8x1x16xf32>
    tpu.vector_store %arg2[%c0_28, %c7, %c0_29], %101 {strides = array<i32>} : memref<8x8x16xf32, #tpu.memory_space<vmem>>, vector<8x1x16xf32>,
    return
  }
  func.func @transform_0(%arg0: i32) -> (i32, i32) {
    %c0_i32 = arith.constant 0 : i32
    %c0_i32_0 = arith.constant 0 : i32
    %c0_i32_1 = arith.constant 0 : i32
    return %c0_i32, %c0_i32_0 : i32, i32
  }
  func.func @transform_1(%arg0: i32) -> (i32, i32, i32) {
    %c0_i32 = arith.constant 0 : i32
    %c0_i32_0 = arith.constant 0 : i32
    %c0_i32_1 = arith.constant 0 : i32
    return %c0_i32, %arg0, %c0_i32_0 : i32, i32, i32
  }
}

</mosaic_0001>

<bundles_post_ra>
// kernel: tpu_custom_call.1
= control target key start
LH: loop header
LB: loop body
LE: loop exit
PB: predicated region body
PF: predicated region fallthrough
CT: control target
= control target key end

     0   :  { %6 = vsyncpa [#allocation3], 0  ;;  %s2114_s0 = inlined_call_operand.hbm [shape: f32[8,128], index: 0, kind: input, shape index: {}]   ;;  %s2115_s1 = inlined_call_operand.hbm [shape: f32[8,16,16], index: 1, kind: output, shape index: {}]  }
   0x1   :  { %7 = vsyncpa [#allocation4], 0 }
   0x2   :  { %9 = vsyncpa [#allocation4 + $0x1], 0  ;;  %s1427_s6 = smov 0   ;;  %s1429_s7 = smov 0  }
   0x3   :  { %s1431_s8 = smov 0   ;;  %s1433_s9 = smov 0  }
   0x4 LB: > { %s1448_s10 = sadd.s32 4294967295, %s1408_s9   ;;  %s978_s11 = sadd.s32 4294967294, %s1408_s9   ;;  %s1408_s9 = sphi %s1433_s9, %s2121_s9   ;;  %s1404_s8 = sphi %s1431_s8, %s2120_s8   ;;  %s1400_s7 = sphi %s1429_s7, %s2119_s7   ;;  %s1396_s6 = sphi %s1427_s6, %s2118_s6  }
   0x5   : > { %s1452_s12 = sadd.s32 1, %s1408_s9   ;;  %s43_s13 = sadd.s32 1, %s1404_s8 }
   0x6   : > { %s40_s14 = ssub.s32 %s1408_s9, %s1452_s12  ;;  %p53_p0 = scmp.ne.s32.totalorder %s1404_s8, %s1400_s7 }
   0x7   : > { %p41_p1 = scmp.eq.s32.totalorder %s40_s14, 0  ;;  %p54_p2 = scmp.eq.s32.totalorder %s1448_s10, 1 }
   0x8   : > { %p59_p3 = scmp.ne.s32.totalorder %s1400_s7, %s1396_s6  ;;  %p60_p4 = scmp.eq.s32.totalorder %s978_s11, 1 }
   0x9   : > { %s1463_s15 = scalar_select %p41_p1, %s1404_s8, %s43_s13  }
   0xa   : > { %p1465_p5 = por %p54_p2, %p53_p0  ;;  %p1469_p6 = por %p60_p4, %p59_p3 }
   0xb   : > { %p979_p7 = scmp.ge.s32.totalorder %s1408_s9, 1  ;;  %p67_p8 = scmp.lt.s32.totalorder %s1408_s9, 3 }
   0xc   : > { %p1264_p9 = scmp.eq.s32.totalorder %s1448_s10, 0  ;;  %s79_s20 = sshll.u32 %s2114_s0, 4  ;;  %s80_s20 = int_to_ptr.hbm [resolvable:$true] %s79_s20 }
   0xd   : > { %p68_p10 = pnand %p979_p7, %p67_p8  ;;  %s1410_s21 = smov [#allocation2]  }
   0xe   : > { %s81_s22 = sshll.u32 %s1410_s21, 4  ;;  %s984_s23 = sshll.u32 (!%p68_p10), %s1448_s10, 3  ;;  %s82_s22 = int_to_ptr.vmem [resolvable:$true] %s81_s22 }
   0xf   : > { %p1256_p11 = pneg %p68_p10  ;;  %94 = sbr.rel (%p68_p10) target bundleno = 319 (0x13f), region = 24 }
  0x11   : > { %p1257_p12 = pnand %p1264_p9, %p1256_p11 }
  0x13   : > { %1259 = dma.hbm_to_vmem [thread:$0]  (!%p1257_p12), %s80_s20, 128, %s82_s22, [#allocation3]  }
  0x14   : > { %v111_v0 = vlaneseq }
  0x15   : > { %1387 = dma.done.wait (%p1264_p9), [#allocation3], 128  }
  0x16   : > { %1389 = vsyncadd (%p1264_p9), [#allocation3], 4294967168  ;;  %v113_v1 = vstv %s984_s23  ;;  %v1411_v2 = vmov 64.0   ;;  %v1488_v3 = vshrl.u32 %v111_v0, 7  ;;  %v116_v4 = vand.u32 127, %v111_v0  ;;  %v148_v59 = vld [vmem:[#allocation2] sm:$0xff]  ;;  %s912_s29 = scalar_lea.hbm %s2115_s1, %s984_s23 }
  0x17   : > { %1306 = vrcp.f32 %v1411_v2  ;;  %v1412_v5 = vmov 0.6931472   ;;  %v1413_v43 = vmov 1.0   ;;  %s107_s24 = sand.u32 1, %s1400_s7   ;;  %s915_s30 = sshll.u32 %s912_s29, 4  ;;  %s916_s30 = int_to_ptr.hbm [resolvable:$true] %s915_s30 }
  0x18   : > { %1308 = vrcp.f32 %v1412_v5  ;;  %v114_v6 = vadd.s32 %v113_v1, %v1488_v3  ;;  %v1492_v34 = vadd.s32 120, %v1488_v3  ;;  %v1495_v35 = vadd.s32 112, %v1488_v3  ;;  %s983_s25 = sshll.u32 %s107_s24, 6  ;;  %s902_s3 = scalar_lea.sflag [#allocation4], %s107_s24 }
  0x19   : > { %v1500_v37 = vadd.s32 104, %v1488_v3  ;;  %v1515_v42 = vadd.s32 96, %v1488_v3  ;;  %v1530_v44 = vadd.s32 88, %v1488_v3  ;;  %v1554_v45 = vadd.s32 80, %v1488_v3  ;;  %s1949_s26 = scalar_lea.vmem [#allocation5], %s983_s25  ;;  %s1356_s4 = sshra.s32 %s916_s30, 4  ;;  %s1357_s4 = int_to_ptr.hbm [resolvable:$true] %s1356_s4 }
  0x1a   : > { %v117_v7 = vsub.s32 %v114_v6, %v116_v4  ;;  %v1569_v46 = vadd.s32 72, %v1488_v3  ;;  %v1584_v47 = vadd.s32 64, %v1488_v3  ;;  %v1599_v48 = vadd.s32 56, %v1488_v3  ;;  %s913_s2 = sshll.u32 %s1949_s26, 4  ;;  %s1358_s5 = scalar_lea.hbm %s1357_s4, 64  ;;  %s914_s2 = int_to_ptr.vmem [resolvable:$true] %s913_s2 }
  0x1b   : > { %v1614_v49 = vadd.s32 48, %v1488_v3  ;;  %v1629_v50 = vadd.s32 40, %v1488_v3  ;;  %v1644_v51 = vadd.s32 32, %v1488_v3  ;;  %v1659_v52 = vadd.s32 24, %v1488_v3  ;;  %p1359_p13 = scmp.ne.s32.totalorder %s1357_s4, %s1358_s5  ;;  %s1362_s13 = scalar_lea.hbm %s2115_s1, 128 }
  0x1c   : > { %vm118_vm0 = vcmp.gt.s32.totalorder %v117_v7, 0  ;;  %v1674_v53 = vadd.s32 16, %v1488_v3  ;;  %v1689_v54 = vadd.s32 8, %v1488_v3  ;;  %p1363_p2 = scmp.lt.s32.totalorder %s1357_s4, %s2115_s1  ;;  %p1364_p3 = scmp.lt.s32.totalorder %s1362_s13, %s1358_s5 }
  0x1d   : > { %v1307_v8 = vpop.eup %1306  ;;  %v119_v11 = vsel %vm118_vm0, %v117_v7, 0  ;;  %p1360_p0 = pnand %p1359_p13, %p1465_p5 }
  0x1e   : > { %v1309_v9 = vpop.eup %1308  ;;  %v125_v10 = vmul.f32 64.0, %v1307_v8  ;;  %vm121_vm1 = vcmp.gt.s32.totalorder %v119_v11, 1  ;;  %vm129_vm2 = vweird.f32 %v1307_v8  ;;  %vm120_vm5 = vcmp.lt.s32.totalorder %v119_v11, 64  ;;  %p1365_p4 = por %p1364_p3, %p1363_p2 }
  0x1f   : > { %v135_v12 = vmul.f32 0.6931472, %v1309_v9  ;;  %v122_v14 = vsel %vm121_vm1, %v119_v11, 1  ;;  %vm139_vm3 = vweird.f32 %v1309_v9  ;;  %p1361_p1 = pneg %p1360_p0 }
  0x20   : > { %v126_v13 = vsub.f32 1.0, %v125_v10  ;;  %v123_v16 = vcvt.s32.f32 %v122_v14 }
  0x21   : > { %v136_v17 = vsub.f32 1.0, %v135_v12  ;;  %p1366_p7 = pnand %p1365_p4, %p1361_p1 }
  0x22   : > { %v127_v15 = vmul.f32 %v1307_v8, %v126_v13 }
  0x23   : > { %v137_v21 = vmul.f32 %v1309_v9, %v136_v17 }
  0x24   : > { %v128_v18 = vadd.f32 %v1307_v8, %v127_v15 }
  0x25   : > { %v138_v22 = vadd.f32 %v1309_v9, %v137_v21 }
  0x26   : > { %v130_v19 = vsel %vm129_vm2, %v1307_v8, %v128_v18 }
  0x27   : > { %v131_v20 = vmul.f32 %v130_v19, %v123_v16  ;;  %v140_v24 = vsel %vm139_vm3, %v1309_v9, %v138_v22 }
  0x29   : > { %1310 = vlog2.f32 %v131_v20 }
  0x2f   : > { %v1311_v23 = vpop.eup %1310 }
  0x30   : > { %v133_v25 = vmul.f32 0.6931472, %v1311_v23 }
  0x32   : > { %v141_v26 = vmul.f32 %v140_v24, %v133_v25 }
  0x34   : > { %v142_v27 = vmul.f32 64.0, %v141_v26 }
  0x36   : > { %vm1245_vm4 = vcmp.lt.s32.totalorder %v142_v27, 0  ;;  %v1246_v28 = vceil.f32 %v142_v27  ;;  %v1247_v29 = vfloor.f32 %v142_v27 }
  0x38   : > { %v1248_v30 = vsel %vm1245_vm4, %v1246_v28, %v1247_v29 }
  0x39   : > { %v1249_v31 = vcvt.f32.s32 %v1248_v30 }
  0x3b   : > { %v144_v32 = vadd.s32 64, %v1249_v31 }
  0x3d   : > { %vm145_vm6 = vcmp.lt.s32.totalorder %v144_v32, 127 }
  0x3e   : > { %v146_v33 = vsel %vm145_vm6, %v144_v32, 127 }
  0x3f   : > { %v1497_v36 = vsel %vm120_vm5, %v119_v11, %v146_v33 }
  0x40   : > { %v1503_v38 = vperm.slane %v1497_v36, 2  ;;  %v1506_v39 = vperm.slane %v1497_v36, 3  ;;  %v1509_v40 = vperm.slane %v1497_v36, 0  ;;  %v1512_v41 = vperm.slane %v1497_v36, 1 }
  0x41   : > { %v1708_v55 = vperm.slane %v1497_v36, 6  ;;  %v1711_v56 = vperm.slane %v1497_v36, 7  ;;  %v1734_v57 = vperm.slane %v1497_v36, 4  ;;  %v1749_v58 = vperm.slane %v1497_v36, 5 }
  0x42   : > { %vm365_vm7 = vcmp.eq.s32.totalorder %v1492_v34, %v1503_v38  ;;  %vm457_vm8 = vcmp.eq.s32.totalorder %v1492_v34, %v1506_v39  ;;  %vm364_vm9 = vcmp.eq.s32.totalorder %v1495_v35, %v1503_v38  ;;  %vm456_vm10 = vcmp.eq.s32.totalorder %v1495_v35, %v1506_v39 }
  0x43   : > { %1065 = vmatpush.msk.msra.mxu2 %vm365_vm7, %v1413_v43  ;;  %1097 = vmatpush.msk.msra.mxu3 %vm457_vm8, %v1413_v43  ;;  %vm180_vm11 = vcmp.eq.s32.totalorder %v1492_v34, %v1509_v40  ;;  %vm363_vm12 = vcmp.eq.s32.totalorder %v1500_v37, %v1503_v38  ;;  %vm455_vm13 = vcmp.eq.s32.totalorder %v1500_v37, %v1506_v39 }
  0x44   : > { %1001 = vmatpush.msk.msra.mxu0 %vm180_vm11, %v1413_v43  ;;  %vm273_vm14 = vcmp.eq.s32.totalorder %v1492_v34, %v1512_v41  ;;  %vm179_vm15 = vcmp.eq.s32.totalorder %v1495_v35, %v1509_v40  ;;  %vm272_vm0 = vcmp.eq.s32.totalorder %v1495_v35, %v1512_v41  ;;  %vm362_vm1 = vcmp.eq.s32.totalorder %v1515_v42, %v1503_v38 }
  0x45   : > { %1066 = vmatpush.msk.msra.mxu2 %vm364_vm9, %v1413_v43  ;;  %1098 = vmatpush.msk.msra.mxu3 %vm456_vm10, %v1413_v43  ;;  %vm454_vm2 = vcmp.eq.s32.totalorder %v1515_v42, %v1506_v39  ;;  %vm178_vm3 = vcmp.eq.s32.totalorder %v1500_v37, %v1509_v40  ;;  %vm271_vm4 = vcmp.eq.s32.totalorder %v1500_v37, %v1512_v41 }
  0x46   : > { %1033 = vmatpush.msk.msra.mxu1 %vm273_vm14, %v1413_v43  ;;  %1002 = vmatpush.msk.msra.mxu0 %vm179_vm15, %v1413_v43  ;;  %vm177_vm5 = vcmp.eq.s32.totalorder %v1515_v42, %v1509_v40  ;;  %vm361_vm6 = vcmp.eq.s32.totalorder %v1530_v44, %v1503_v38  ;;  %vm453_vm7 = vcmp.eq.s32.totalorder %v1530_v44, %v1506_v39 }
  0x47   : > { %1067 = vmatpush.msk.msra.mxu2 %vm363_vm12, %v1413_v43  ;;  %1099 = vmatpush.msk.msra.mxu3 %vm455_vm13, %v1413_v43  ;;  %vm270_vm8 = vcmp.eq.s32.totalorder %v1515_v42, %v1512_v41  ;;  %vm176_vm9 = vcmp.eq.s32.totalorder %v1530_v44, %v1509_v40  ;;  %vm360_vm10 = vcmp.eq.s32.totalorder %v1554_v45, %v1503_v38 }
  0x48   : > { %1034 = vmatpush.msk.msra.mxu1 %vm272_vm0, %v1413_v43  ;;  %1003 = vmatpush.msk.msra.mxu0 %vm178_vm3, %v1413_v43  ;;  %vm452_vm11 = vcmp.eq.s32.totalorder %v1554_v45, %v1506_v39  ;;  %vm269_vm12 = vcmp.eq.s32.totalorder %v1530_v44, %v1512_v41  ;;  %vm175_vm13 = vcmp.eq.s32.totalorder %v1554_v45, %v1509_v40 }
  0x49   : > { %1068 = vmatpush.msk.msra.mxu2 %vm362_vm1, %v1413_v43  ;;  %1100 = vmatpush.msk.msra.mxu3 %vm454_vm2, %v1413_v43  ;;  %vm359_vm14 = vcmp.eq.s32.totalorder %v1569_v46, %v1503_v38  ;;  %vm451_vm15 = vcmp.eq.s32.totalorder %v1569_v46, %v1506_v39  ;;  %vm268_vm0 = vcmp.eq.s32.totalorder %v1554_v45, %v1512_v41 }
  0x4a   : > { %1035 = vmatpush.msk.msra.mxu1 %vm271_vm4, %v1413_v43  ;;  %1004 = vmatpush.msk.msra.mxu0 %vm177_vm5, %v1413_v43  ;;  %vm174_vm1 = vcmp.eq.s32.totalorder %v1569_v46, %v1509_v40  ;;  %vm358_vm2 = vcmp.eq.s32.totalorder %v1584_v47, %v1503_v38  ;;  %vm450_vm3 = vcmp.eq.s32.totalorder %v1584_v47, %v1506_v39 }
  0x4b   : > { %1069 = vmatpush.msk.msra.mxu2 %vm361_vm6, %v1413_v43  ;;  %1101 = vmatpush.msk.msra.mxu3 %vm453_vm7, %v1413_v43  ;;  %vm267_vm4 = vcmp.eq.s32.totalorder %v1569_v46, %v1512_v41  ;;  %vm173_vm5 = vcmp.eq.s32.totalorder %v1584_v47, %v1509_v40  ;;  %vm357_vm6 = vcmp.eq.s32.totalorder %v1599_v48, %v1503_v38 }
  0x4c   : > { %1036 = vmatpush.msk.msra.mxu1 %vm270_vm8, %v1413_v43  ;;  %1005 = vmatpush.msk.msra.mxu0 %vm176_vm9, %v1413_v43  ;;  %vm449_vm7 = vcmp.eq.s32.totalorder %v1599_v48, %v1506_v39  ;;  %vm266_vm8 = vcmp.eq.s32.totalorder %v1584_v47, %v1512_v41  ;;  %vm172_vm9 = vcmp.eq.s32.totalorder %v1599_v48, %v1509_v40 }
  0x4d   : > { %1070 = vmatpush.msk.msra.mxu2 %vm360_vm10, %v1413_v43  ;;  %1102 = vmatpush.msk.msra.mxu3 %vm452_vm11, %v1413_v43  ;;  %vm356_vm10 = vcmp.eq.s32.totalorder %v1614_v49, %v1503_v38  ;;  %vm448_vm11 = vcmp.eq.s32.totalorder %v1614_v49, %v1506_v39 }
  0x4e   : > { %1037 = vmatpush.msk.msra.mxu1 %vm269_vm12, %v1413_v43  ;;  %1006 = vmatpush.msk.msra.mxu0 %vm175_vm13, %v1413_v43  ;;  %vm265_vm12 = vcmp.eq.s32.totalorder %v1599_v48, %v1512_v41  ;;  %vm171_vm13 = vcmp.eq.s32.totalorder %v1614_v49, %v1509_v40 }
  0x4f   : > { %1071 = vmatpush.msk.msra.mxu2 %vm359_vm14, %v1413_v43  ;;  %1103 = vmatpush.msk.msra.mxu3 %vm451_vm15, %v1413_v43  ;;  %vm355_vm14 = vcmp.eq.s32.totalorder %v1629_v50, %v1503_v38  ;;  %vm447_vm15 = vcmp.eq.s32.totalorder %v1629_v50, %v1506_v39 }
  0x50   : > { %1038 = vmatpush.msk.msra.mxu1 %vm268_vm0, %v1413_v43  ;;  %1007 = vmatpush.msk.msra.mxu0 %vm174_vm1, %v1413_v43  ;;  %vm264_vm0 = vcmp.eq.s32.totalorder %v1614_v49, %v1512_v41  ;;  %vm170_vm1 = vcmp.eq.s32.totalorder %v1629_v50, %v1509_v40 }
  0x51   : > { %1072 = vmatpush.msk.msra.mxu2 %vm358_vm2, %v1413_v43  ;;  %1104 = vmatpush.msk.msra.mxu3 %vm450_vm3, %v1413_v43  ;;  %vm354_vm2 = vcmp.eq.s32.totalorder %v1644_v51, %v1503_v38  ;;  %vm446_vm3 = vcmp.eq.s32.totalorder %v1644_v51, %v1506_v39 }
  0x52   : > { %1039 = vmatpush.msk.msra.mxu1 %vm267_vm4, %v1413_v43  ;;  %1008 = vmatpush.msk.msra.mxu0 %vm173_vm5, %v1413_v43  ;;  %vm263_vm4 = vcmp.eq.s32.totalorder %v1629_v50, %v1512_v41  ;;  %vm169_vm5 = vcmp.eq.s32.totalorder %v1644_v51, %v1509_v40 }
  0x53   : > { %1073 = vmatpush.msk.msra.mxu2 %vm357_vm6, %v1413_v43  ;;  %1105 = vmatpush.msk.msra.mxu3 %vm449_vm7, %v1413_v43  ;;  %vm353_vm6 = vcmp.eq.s32.totalorder %v1659_v52, %v1503_v38  ;;  %vm445_vm7 = vcmp.eq.s32.totalorder %v1659_v52, %v1506_v39 }
  0x54   : > { %1040 = vmatpush.msk.msra.mxu1 %vm266_vm8, %v1413_v43  ;;  %1009 = vmatpush.msk.msra.mxu0 %vm172_vm9, %v1413_v43  ;;  %vm262_vm8 = vcmp.eq.s32.totalorder %v1644_v51, %v1512_v41  ;;  %vm168_vm9 = vcmp.eq.s32.totalorder %v1659_v52, %v1509_v40 }
  0x55   : > { %1074 = vmatpush.msk.msra.mxu2 %vm356_vm10, %v1413_v43  ;;  %1106 = vmatpush.msk.msra.mxu3 %vm448_vm11, %v1413_v43  ;;  %vm352_vm10 = vcmp.eq.s32.totalorder %v1674_v53, %v1503_v38  ;;  %vm444_vm11 = vcmp.eq.s32.totalorder %v1674_v53, %v1506_v39 }
  0x56   : > { %1041 = vmatpush.msk.msra.mxu1 %vm265_vm12, %v1413_v43  ;;  %1010 = vmatpush.msk.msra.mxu0 %vm171_vm13, %v1413_v43  ;;  %vm261_vm12 = vcmp.eq.s32.totalorder %v1659_v52, %v1512_v41  ;;  %vm167_vm13 = vcmp.eq.s32.totalorder %v1674_v53, %v1509_v40 }
  0x57   : > { %1075 = vmatpush.msk.msra.mxu2 %vm355_vm14, %v1413_v43  ;;  %1107 = vmatpush.msk.msra.mxu3 %vm447_vm15, %v1413_v43  ;;  %vm351_vm14 = vcmp.eq.s32.totalorder %v1689_v54, %v1503_v38  ;;  %vm443_vm15 = vcmp.eq.s32.totalorder %v1689_v54, %v1506_v39 }
  0x58   : > { %1042 = vmatpush.msk.msra.mxu1 %vm264_vm0, %v1413_v43  ;;  %1011 = vmatpush.msk.msra.mxu0 %vm170_vm1, %v1413_v43  ;;  %vm260_vm0 = vcmp.eq.s32.totalorder %v1674_v53, %v1512_v41  ;;  %vm166_vm1 = vcmp.eq.s32.totalorder %v1689_v54, %v1509_v40 }
  0x59   : > { %1076 = vmatpush.msk.msra.mxu2 %vm354_vm2, %v1413_v43  ;;  %1108 = vmatpush.msk.msra.mxu3 %vm446_vm3, %v1413_v43  ;;  %vm350_vm2 = vcmp.eq.s32.totalorder %v1488_v3, %v1503_v38  ;;  %vm442_vm3 = vcmp.eq.s32.totalorder %v1488_v3, %v1506_v39 }
  0x5a   : > { %1043 = vmatpush.msk.msra.mxu1 %vm263_vm4, %v1413_v43  ;;  %1012 = vmatpush.msk.msra.mxu0 %vm169_vm5, %v1413_v43  ;;  %vm733_vm4 = vcmp.eq.s32.totalorder %v1492_v34, %v1708_v55  ;;  %vm825_vm5 = vcmp.eq.s32.totalorder %v1492_v34, %v1711_v56 }
  0x5b   : > { %1077 = vmatpush.msk.msra.mxu2 %vm353_vm6, %v1413_v43  ;;  %1109 = vmatpush.msk.msra.mxu3 %vm445_vm7, %v1413_v43  ;;  %vm259_vm6 = vcmp.eq.s32.totalorder %v1689_v54, %v1512_v41  ;;  %vm165_vm7 = vcmp.eq.s32.totalorder %v1488_v3, %v1509_v40 }
  0x5c   : > { %1044 = vmatpush.msk.msra.mxu1 %vm262_vm8, %v1413_v43  ;;  %1013 = vmatpush.msk.msra.mxu0 %vm168_vm9, %v1413_v43  ;;  %vm732_vm8 = vcmp.eq.s32.totalorder %v1495_v35, %v1708_v55  ;;  %vm824_vm9 = vcmp.eq.s32.totalorder %v1495_v35, %v1711_v56 }
  0x5d   : > { %1078 = vmatpush.msk.msra.mxu2 %vm352_vm10, %v1413_v43  ;;  %1110 = vmatpush.msk.msra.mxu3 %vm444_vm11, %v1413_v43  ;;  %vm258_vm10 = vcmp.eq.s32.totalorder %v1488_v3, %v1512_v41  ;;  %vm549_vm11 = vcmp.eq.s32.totalorder %v1492_v34, %v1734_v57 }
  0x5e   : > { %1045 = vmatpush.msk.msra.mxu1 %vm261_vm12, %v1413_v43  ;;  %1014 = vmatpush.msk.msra.mxu0 %vm167_vm13, %v1413_v43  ;;  %vm731_vm12 = vcmp.eq.s32.totalorder %v1500_v37, %v1708_v55  ;;  %vm823_vm13 = vcmp.eq.s32.totalorder %v1500_v37, %v1711_v56 }
  0x5f   : > { %1079 = vmatpush.msk.msra.mxu2 %vm351_vm14, %v1413_v43  ;;  %1111 = vmatpush.msk.msra.mxu3 %vm443_vm15, %v1413_v43  ;;  %vm641_vm14 = vcmp.eq.s32.totalorder %v1492_v34, %v1749_v58  ;;  %vm548_vm15 = vcmp.eq.s32.totalorder %v1495_v35, %v1734_v57 }
  0x60   : > { %1046 = vmatpush.msk.msra.mxu1 %vm260_vm0, %v1413_v43  ;;  %1015 = vmatpush.msk.msra.mxu0 %vm166_vm1, %v1413_v43  ;;  %vm730_vm0 = vcmp.eq.s32.totalorder %v1515_v42, %v1708_v55  ;;  %vm822_vm1 = vcmp.eq.s32.totalorder %v1515_v42, %v1711_v56 }
  0x61   : > { %1080 = vmatpush.msk.msra.mxu2 %vm350_vm2, %v1413_v43  ;;  %1112 = vmatpush.msk.msra.mxu3 %vm442_vm3, %v1413_v43  ;;  %vm640_vm2 = vcmp.eq.s32.totalorder %v1495_v35, %v1749_v58  ;;  %vm547_vm3 = vcmp.eq.s32.totalorder %v1500_v37, %v1734_v57 }
  0x62   : > { %1047 = vmatpush.msk.msra.mxu1 %vm259_vm6, %v1413_v43  ;;  %1016 = vmatpush.msk.msra.mxu0 %vm165_vm7, %v1413_v43  ;;  %vm639_vm6 = vcmp.eq.s32.totalorder %v1500_v37, %v1749_v58  ;;  %vm546_vm7 = vcmp.eq.s32.totalorder %v1515_v42, %v1734_v57 }
  0x63   : > { %1193 = vmatpush.msk.msrb.mxu2 %vm733_vm4, %v1413_v43  ;;  %1225 = vmatpush.msk.msrb.mxu3 %vm825_vm5, %v1413_v43  ;;  %vm729_vm4 = vcmp.eq.s32.totalorder %v1530_v44, %v1708_v55  ;;  %vm821_vm5 = vcmp.eq.s32.totalorder %v1530_v44, %v1711_v56 }
  0x64   : > { %1048 = vmatpush.msk.msra.mxu1 %vm258_vm10, %v1413_v43  ;;  %1129 = vmatpush.msk.msrb.mxu0 %vm549_vm11, %v1413_v43  ;;  %vm638_vm10 = vcmp.eq.s32.totalorder %v1515_v42, %v1749_v58  ;;  %vm545_vm11 = vcmp.eq.s32.totalorder %v1530_v44, %v1734_v57 }
  0x65   : > { %1194 = vmatpush.msk.msrb.mxu2 %vm732_vm8, %v1413_v43  ;;  %1226 = vmatpush.msk.msrb.mxu3 %vm824_vm9, %v1413_v43  ;;  %vm728_vm8 = vcmp.eq.s32.totalorder %v1554_v45, %v1708_v55  ;;  %vm820_vm9 = vcmp.eq.s32.totalorder %v1554_v45, %v1711_v56 }
  0x66   : > { %1161 = vmatpush.msk.msrb.mxu1 %vm641_vm14, %v1413_v43  ;;  %1130 = vmatpush.msk.msrb.mxu0 %vm548_vm15, %v1413_v43  ;;  %vm637_vm14 = vcmp.eq.s32.totalorder %v1530_v44, %v1749_v58  ;;  %vm544_vm15 = vcmp.eq.s32.totalorder %v1554_v45, %v1734_v57 }
  0x67   : > { %1195 = vmatpush.msk.msrb.mxu2 %vm731_vm12, %v1413_v43  ;;  %1227 = vmatpush.msk.msrb.mxu3 %vm823_vm13, %v1413_v43  ;;  %vm727_vm12 = vcmp.eq.s32.totalorder %v1569_v46, %v1708_v55  ;;  %vm819_vm13 = vcmp.eq.s32.totalorder %v1569_v46, %v1711_v56 }
  0x68   : > { %1162 = vmatpush.msk.msrb.mxu1 %vm640_vm2, %v1413_v43  ;;  %1131 = vmatpush.msk.msrb.mxu0 %vm547_vm3, %v1413_v43  ;;  %vm636_vm2 = vcmp.eq.s32.totalorder %v1554_v45, %v1749_v58  ;;  %vm543_vm3 = vcmp.eq.s32.totalorder %v1569_v46, %v1734_v57 }
  0x69   : > { %1196 = vmatpush.msk.msrb.mxu2 %vm730_vm0, %v1413_v43  ;;  %1228 = vmatpush.msk.msrb.mxu3 %vm822_vm1, %v1413_v43  ;;  %vm726_vm0 = vcmp.eq.s32.totalorder %v1584_v47, %v1708_v55  ;;  %vm818_vm1 = vcmp.eq.s32.totalorder %v1584_v47, %v1711_v56 }
  0x6a   : > { %1163 = vmatpush.msk.msrb.mxu1 %vm639_vm6, %v1413_v43  ;;  %1132 = vmatpush.msk.msrb.mxu0 %vm546_vm7, %v1413_v43  ;;  %vm635_vm6 = vcmp.eq.s32.totalorder %v1569_v46, %v1749_v58  ;;  %vm542_vm7 = vcmp.eq.s32.totalorder %v1584_v47, %v1734_v57 }
  0x6b   : > { %1197 = vmatpush.msk.msrb.mxu2 %vm729_vm4, %v1413_v43  ;;  %1229 = vmatpush.msk.msrb.mxu3 %vm821_vm5, %v1413_v43  ;;  %vm725_vm4 = vcmp.eq.s32.totalorder %v1599_v48, %v1708_v55  ;;  %vm817_vm5 = vcmp.eq.s32.totalorder %v1599_v48, %v1711_v56 }
  0x6c   : > { %1164 = vmatpush.msk.msrb.mxu1 %vm638_vm10, %v1413_v43  ;;  %1133 = vmatpush.msk.msrb.mxu0 %vm545_vm11, %v1413_v43  ;;  %vm634_vm10 = vcmp.eq.s32.totalorder %v1584_v47, %v1749_v58  ;;  %vm541_vm11 = vcmp.eq.s32.totalorder %v1599_v48, %v1734_v57 }
  0x6d   : > { %1198 = vmatpush.msk.msrb.mxu2 %vm728_vm8, %v1413_v43  ;;  %1230 = vmatpush.msk.msrb.mxu3 %vm820_vm9, %v1413_v43  ;;  %vm724_vm8 = vcmp.eq.s32.totalorder %v1614_v49, %v1708_v55  ;;  %vm816_vm9 = vcmp.eq.s32.totalorder %v1614_v49, %v1711_v56 }
  0x6e   : > { %1165 = vmatpush.msk.msrb.mxu1 %vm637_vm14, %v1413_v43  ;;  %1134 = vmatpush.msk.msrb.mxu0 %vm544_vm15, %v1413_v43  ;;  %vm633_vm14 = vcmp.eq.s32.totalorder %v1599_v48, %v1749_v58  ;;  %vm722_vm15 = vcmp.eq.s32.totalorder %v1644_v51, %v1708_v55 }
  0x6f   : > { %1199 = vmatpush.msk.msrb.mxu2 %vm727_vm12, %v1413_v43  ;;  %1231 = vmatpush.msk.msrb.mxu3 %vm819_vm13, %v1413_v43  ;;  %vm723_vm12 = vcmp.eq.s32.totalorder %v1629_v50, %v1708_v55  ;;  %vm815_vm13 = vcmp.eq.s32.totalorder %v1629_v50, %v1711_v56 }
  0x70   : > { %1166 = vmatpush.msk.msrb.mxu1 %vm636_vm2, %v1413_v43  ;;  %1135 = vmatpush.msk.msrb.mxu0 %vm543_vm3, %v1413_v43  ;;  %vm632_vm2 = vcmp.eq.s32.totalorder %v1614_v49, %v1749_v58  ;;  %vm721_vm3 = vcmp.eq.s32.totalorder %v1659_v52, %v1708_v55 }
  0x71   : > { %1200 = vmatpush.msk.msrb.mxu2 %vm726_vm0, %v1413_v43  ;;  %1232 = vmatpush.msk.msrb.mxu3 %vm818_vm1, %v1413_v43  ;;  %vm814_vm0 = vcmp.eq.s32.totalorder %v1644_v51, %v1711_v56  ;;  %vm540_vm1 = vcmp.eq.s32.totalorder %v1614_v49, %v1734_v57 }
  0x72   : > { %1167 = vmatpush.msk.msrb.mxu1 %vm635_vm6, %v1413_v43  ;;  %1136 = vmatpush.msk.msrb.mxu0 %vm542_vm7, %v1413_v43  ;;  %vm631_vm6 = vcmp.eq.s32.totalorder %v1629_v50, %v1749_v58  ;;  %vm720_vm7 = vcmp.eq.s32.totalorder %v1674_v53, %v1708_v55 }
  0x73   : > { %1201 = vmatpush.msk.msrb.mxu2 %vm725_vm4, %v1413_v43  ;;  %1233 = vmatpush.msk.msrb.mxu3 %vm817_vm5, %v1413_v43  ;;  %vm813_vm4 = vcmp.eq.s32.totalorder %v1659_v52, %v1711_v56  ;;  %vm539_vm5 = vcmp.eq.s32.totalorder %v1629_v50, %v1734_v57 }
  0x74   : > { %1168 = vmatpush.msk.msrb.mxu1 %vm634_vm10, %v1413_v43  ;;  %1137 = vmatpush.msk.msrb.mxu0 %vm541_vm11, %v1413_v43  ;;  %vm630_vm10 = vcmp.eq.s32.totalorder %v1644_v51, %v1749_v58  ;;  %vm719_vm11 = vcmp.eq.s32.totalorder %v1689_v54, %v1708_v55 }
  0x75   : > { %1202 = vmatpush.msk.msrb.mxu2 %vm724_vm8, %v1413_v43  ;;  %1234 = vmatpush.msk.msrb.mxu3 %vm816_vm9, %v1413_v43  ;;  %vm812_vm8 = vcmp.eq.s32.totalorder %v1674_v53, %v1711_v56  ;;  %vm538_vm9 = vcmp.eq.s32.totalorder %v1644_v51, %v1734_v57 }
  0x76   : > { %1169 = vmatpush.msk.msrb.mxu1 %vm633_vm14, %v1413_v43  ;;  %414 = vmatmul.f32.vlgmr.msra.gmra.mxu2 %v148_v59  ;;  %vm629_vm14 = vcmp.eq.s32.totalorder %v1659_v52, %v1749_v58 }
  0x77   : > { %1203 = vmatpush.msk.msrb.mxu2 %vm723_vm12, %v1413_v43  ;;  %1235 = vmatpush.msk.msrb.mxu3 %vm815_vm13, %v1413_v43  ;;  %vm811_vm12 = vcmp.eq.s32.totalorder %v1689_v54, %v1711_v56  ;;  %vm537_vm13 = vcmp.eq.s32.totalorder %v1659_v52, %v1734_v57 }
  0x78   : > { %506 = vmatmul.f32.vlgmr.msra.gmra.mxu3 %v148_v59  ;;  %1138 = vmatpush.msk.msrb.mxu0 %vm540_vm1, %v1413_v43  ;;  %vm536_vm1 = vcmp.eq.s32.totalorder %v1674_v53, %v1734_v57 }
  0x79   : > { %1204 = vmatpush.msk.msrb.mxu2 %vm722_vm15, %v1413_v43  ;;  %1236 = vmatpush.msk.msrb.mxu3 %vm814_vm0, %v1413_v43  ;;  %vm718_vm15 = vcmp.eq.s32.totalorder %v1488_v3, %v1708_v55  ;;  %vm810_vm0 = vcmp.eq.s32.totalorder %v1488_v3, %v1711_v56 }
  0x7a   : > { %1170 = vmatpush.msk.msrb.mxu1 %vm632_vm2, %v1413_v43  ;;  %1139 = vmatpush.msk.msrb.mxu0 %vm539_vm5, %v1413_v43  ;;  %vm628_vm2 = vcmp.eq.s32.totalorder %v1674_v53, %v1749_v58  ;;  %vm534_vm5 = vcmp.eq.s32.totalorder %v1488_v3, %v1734_v57 }
  0x7b   : > { %1205 = vmatpush.msk.msrb.mxu2 %vm721_vm3, %v1413_v43  ;;  %1237 = vmatpush.msk.msrb.mxu3 %vm813_vm4, %v1413_v43  ;;  %vm535_vm3 = vcmp.eq.s32.totalorder %v1689_v54, %v1734_v57  ;;  %vm627_vm4 = vcmp.eq.s32.totalorder %v1689_v54, %v1749_v58 }
  0x7c   : > { %1171 = vmatpush.msk.msrb.mxu1 %vm631_vm6, %v1413_v43  ;;  %1140 = vmatpush.msk.msrb.mxu0 %vm538_vm9, %v1413_v43  ;;  %vm626_vm6 = vcmp.eq.s32.totalorder %v1488_v3, %v1749_v58 }
  0x7d   : > { %1206 = vmatpush.msk.msrb.mxu2 %vm720_vm7, %v1413_v43  ;;  %1238 = vmatpush.msk.msrb.mxu3 %vm812_vm8, %v1413_v43  ;;  %vm248_vm7 = vcmask 122880  }
  0x7e   : > { %1172 = vmatpush.msk.msrb.mxu1 %vm630_vm10, %v1413_v43  ;;  %229 = vmatmul.f32.vlgmr.msra.gmra.mxu0 %v148_v59 }
  0x7f   : > { %1207 = vmatpush.msk.msrb.mxu2 %vm719_vm11, %v1413_v43  ;;  %1239 = vmatpush.msk.msrb.mxu3 %vm811_vm12, %v1413_v43 }
  0x80   : > { %322 = vmatmul.f32.vlgmr.msra.gmra.mxu1 %v148_v59  ;;  %1141 = vmatpush.msk.msrb.mxu0 %vm537_vm13, %v1413_v43 }
  0x81   : > { %1173 = vmatpush.msk.msrb.mxu1 %vm629_vm14, %v1413_v43  ;;  %1208 = vmatpush.msk.msrb.mxu2 %vm718_vm15, %v1413_v43 }
  0x82   : > { %1240 = vmatpush.msk.msrb.mxu3 %vm810_vm0, %v1413_v43  ;;  %782 = vmatmul.f32.vlgmr.msrb.gmra.mxu2 %v148_v59 }
  0x83   : > { %874 = vmatmul.f32.vlgmr.msrb.gmra.mxu3 %v148_v59  ;;  %1142 = vmatpush.msk.msrb.mxu0 %vm536_vm1, %v1413_v43 }
  0x84   : > { %1174 = vmatpush.msk.msrb.mxu1 %vm628_vm2, %v1413_v43 }
  0x85   : > { %1143 = vmatpush.msk.msrb.mxu0 %vm535_vm3, %v1413_v43 }
  0x86   : > { %1175 = vmatpush.msk.msrb.mxu1 %vm627_vm4, %v1413_v43 }
  0x87   : > { %1144 = vmatpush.msk.msrb.mxu0 %vm534_vm5, %v1413_v43 }
  0x88   : > { %1176 = vmatpush.msk.msrb.mxu1 %vm626_vm6, %v1413_v43  ;;  %598 = vmatmul.f32.vlgmr.msrb.gmra.mxu0 %v148_v59 }
  0x89   : > { %690 = vmatmul.f32.vlgmr.msrb.gmra.mxu1 %v148_v59 }
  0xf9   : > { %v415_v60 = vpop.f32.mrf.mxu2 }
  0xfa   : > { %433 = vst.msk [vmem:[%s1949_s26 + $0x2] sm:$0x1] %vm248_vm7, %v415_v60  ;;  %v419_v13 = vrot.slane %v415_v60, 1  ;;  %v420_v14 = vrot.slane %v415_v60, 2  ;;  %v421_v15 = vrot.slane %v415_v60, 3  ;;  %v422_v16 = vrot.slane %v415_v60, 4 }
  0xfb   : > { %v230_v61 = vpop.f32.mrf.mxu0  ;;  %v423_v17 = vrot.slane %v415_v60, 5  ;;  %v424_v18 = vrot.slane %v415_v60, 6  ;;  %v507_v19 = vpop.f32.mrf.mxu3  ;;  %v425_v20 = vrot.slane %v415_v60, 7 }
  0xfc   : > { %v234_v62 = vrot.slane %v230_v61, 1  ;;  %v235_v63 = vrot.slane %v230_v61, 2  ;;  %v236_v0 = vrot.slane %v230_v61, 3  ;;  %249 = vst.msk [vmem:[%s1949_s26] sm:$0x1] %vm248_vm7, %v230_v61  ;;  %v237_v2 = vrot.slane %v230_v61, 4 }
  0xfd   : > { %v323_v1 = vpop.f32.mrf.mxu1  ;;  %v238_v3 = vrot.slane %v230_v61, 5  ;;  %v239_v4 = vrot.slane %v230_v61, 6  ;;  %v240_v5 = vrot.slane %v230_v61, 7  ;;  %434 = vst.msk [vmem:[%s1949_s26 + $0xa] sm:$0x1] %vm248_vm7, %v419_v13  ;;  %v511_v21 = vrot.slane %v507_v19, 1 }
  0xfe   : > { %341 = vst.msk [vmem:[%s1949_s26 + $0x1] sm:$0x1] %vm248_vm7, %v323_v1  ;;  %v327_v6 = vrot.slane %v323_v1, 1  ;;  %v328_v7 = vrot.slane %v323_v1, 2  ;;  %v329_v8 = vrot.slane %v323_v1, 3  ;;  %v330_v9 = vrot.slane %v323_v1, 4 }
  0xff   : > { %250 = vst.msk [vmem:[%s1949_s26 + $0x8] sm:$0x1] %vm248_vm7, %v234_v62  ;;  %v331_v10 = vrot.slane %v323_v1, 5  ;;  %v332_v11 = vrot.slane %v323_v1, 6  ;;  %v333_v12 = vrot.slane %v323_v1, 7  ;;  %v512_v22 = vrot.slane %v507_v19, 2 }
 0x100   : > { %251 = vst.msk [vmem:[%s1949_s26 + $0x10] sm:$0x1] %vm248_vm7, %v235_v63  ;;  %v513_v23 = vrot.slane %v507_v19, 3  ;;  %v514_v24 = vrot.slane %v507_v19, 4  ;;  %v515_v25 = vrot.slane %v507_v19, 5  ;;  %v516_v26 = vrot.slane %v507_v19, 6 }
 0x101   : > { %252 = vst.msk [vmem:[%s1949_s26 + $0x18] sm:$0x1] %vm248_vm7, %v236_v0  ;;  %v517_v28 = vrot.slane %v507_v19, 7 }
 0x102   : > { %253 = vst.msk [vmem:[%s1949_s26 + $0x20] sm:$0x1] %vm248_vm7, %v237_v2 }
 0x103   : > { %254 = vst.msk [vmem:[%s1949_s26 + $0x28] sm:$0x1] %vm248_vm7, %v238_v3 }
 0x104   : > { %255 = vst.msk [vmem:[%s1949_s26 + $0x30] sm:$0x1] %vm248_vm7, %v239_v4 }
 0x105   : > { %256 = vst.msk [vmem:[%s1949_s26 + $0x38] sm:$0x1] %vm248_vm7, %v240_v5  ;;  %v599_v27 = vpop.f32.mrf.mxu0  ;;  %v783_v43 = vpop.f32.mrf.mxu2 }
 0x106   : > { %342 = vst.msk [vmem:[%s1949_s26 + $0x9] sm:$0x1] %vm248_vm7, %v327_v6  ;;  %v603_v29 = vrot.slane %v599_v27, 1  ;;  %v604_v30 = vrot.slane %v599_v27, 2  ;;  %v605_v31 = vrot.slane %v599_v27, 3  ;;  %v606_v32 = vrot.slane %v599_v27, 4  ;;  %v691_v35 = vpop.f32.mrf.mxu1  ;;  %v875_v51 = vpop.f32.mrf.mxu3 }
 0x107   : > { %343 = vst.msk [vmem:[%s1949_s26 + $0x11] sm:$0x1] %vm248_vm7, %v328_v7  ;;  %v607_v33 = vrot.slane %v599_v27, 5  ;;  %v608_v34 = vrot.slane %v599_v27, 6  ;;  %v609_v36 = vrot.slane %v599_v27, 7  ;;  %v695_v37 = vrot.slane %v691_v35, 1 }
 0x108   : > { %344 = vst.msk [vmem:[%s1949_s26 + $0x19] sm:$0x1] %vm248_vm7, %v329_v8  ;;  %v696_v38 = vrot.slane %v691_v35, 2  ;;  %v697_v39 = vrot.slane %v691_v35, 3  ;;  %v698_v40 = vrot.slane %v691_v35, 4  ;;  %v699_v41 = vrot.slane %v691_v35, 5 }
 0x109   : > { %345 = vst.msk [vmem:[%s1949_s26 + $0x21] sm:$0x1] %vm248_vm7, %v330_v9  ;;  %v700_v42 = vrot.slane %v691_v35, 6  ;;  %v701_v44 = vrot.slane %v691_v35, 7  ;;  %v787_v45 = vrot.slane %v783_v43, 1  ;;  %v788_v46 = vrot.slane %v783_v43, 2 }
 0x10a   : > { %346 = vst.msk [vmem:[%s1949_s26 + $0x29] sm:$0x1] %vm248_vm7, %v331_v10  ;;  %v789_v47 = vrot.slane %v783_v43, 3  ;;  %v790_v48 = vrot.slane %v783_v43, 4  ;;  %v791_v49 = vrot.slane %v783_v43, 5  ;;  %v792_v50 = vrot.slane %v783_v43, 6 }
 0x10b   : > { %347 = vst.msk [vmem:[%s1949_s26 + $0x31] sm:$0x1] %vm248_vm7, %v332_v11  ;;  %v793_v52 = vrot.slane %v783_v43, 7  ;;  %v879_v53 = vrot.slane %v875_v51, 1  ;;  %v880_v54 = vrot.slane %v875_v51, 2  ;;  %v881_v55 = vrot.slane %v875_v51, 3 }
 0x10c   : > { %348 = vst.msk [vmem:[%s1949_s26 + $0x39] sm:$0x1] %vm248_vm7, %v333_v12  ;;  %v882_v56 = vrot.slane %v875_v51, 4  ;;  %v883_v57 = vrot.slane %v875_v51, 5  ;;  %v884_v58 = vrot.slane %v875_v51, 6  ;;  %v885_v59 = vrot.slane %v875_v51, 7 }
 0x10d   : > { %435 = vst.msk [vmem:[%s1949_s26 + $0x12] sm:$0x1] %vm248_vm7, %v420_v14 }
 0x10e   : > { %436 = vst.msk [vmem:[%s1949_s26 + $0x1a] sm:$0x1] %vm248_vm7, %v421_v15 }
 0x10f   : > { %437 = vst.msk [vmem:[%s1949_s26 + $0x22] sm:$0x1] %vm248_vm7, %v422_v16 }
 0x110   : > { %438 = vst.msk [vmem:[%s1949_s26 + $0x2a] sm:$0x1] %vm248_vm7, %v423_v17 }
 0x111   : > { %439 = vst.msk [vmem:[%s1949_s26 + $0x32] sm:$0x1] %vm248_vm7, %v424_v18 }
 0x112   : > { %440 = vst.msk [vmem:[%s1949_s26 + $0x3a] sm:$0x1] %vm248_vm7, %v425_v20 }
 0x113   : > { %525 = vst.msk [vmem:[%s1949_s26 + $0x3] sm:$0x1] %vm248_vm7, %v507_v19 }
 0x114   : > { %526 = vst.msk [vmem:[%s1949_s26 + $0xb] sm:$0x1] %vm248_vm7, %v511_v21 }
 0x115   : > { %527 = vst.msk [vmem:[%s1949_s26 + $0x13] sm:$0x1] %vm248_vm7, %v512_v22 }
 0x116   : > { %528 = vst.msk [vmem:[%s1949_s26 + $0x1b] sm:$0x1] %vm248_vm7, %v513_v23 }
 0x117   : > { %529 = vst.msk [vmem:[%s1949_s26 + $0x23] sm:$0x1] %vm248_vm7, %v514_v24 }
 0x118   : > { %530 = vst.msk [vmem:[%s1949_s26 + $0x2b] sm:$0x1] %vm248_vm7, %v515_v25 }
 0x119   : > { %531 = vst.msk [vmem:[%s1949_s26 + $0x33] sm:$0x1] %vm248_vm7, %v516_v26 }
 0x11a   : > { %532 = vst.msk [vmem:[%s1949_s26 + $0x3b] sm:$0x1] %vm248_vm7, %v517_v28 }
 0x11b   : > { %617 = vst.msk [vmem:[%s1949_s26 + $0x4] sm:$0x1] %vm248_vm7, %v599_v27 }
 0x11c   : > { %618 = vst.msk [vmem:[%s1949_s26 + $0xc] sm:$0x1] %vm248_vm7, %v603_v29 }
 0x11d   : > { %619 = vst.msk [vmem:[%s1949_s26 + $0x14] sm:$0x1] %vm248_vm7, %v604_v30 }
 0x11e   : > { %620 = vst.msk [vmem:[%s1949_s26 + $0x1c] sm:$0x1] %vm248_vm7, %v605_v31 }
 0x11f   : > { %621 = vst.msk [vmem:[%s1949_s26 + $0x24] sm:$0x1] %vm248_vm7, %v606_v32 }
 0x120   : > { %622 = vst.msk [vmem:[%s1949_s26 + $0x2c] sm:$0x1] %vm248_vm7, %v607_v33 }
 0x121   : > { %623 = vst.msk [vmem:[%s1949_s26 + $0x34] sm:$0x1] %vm248_vm7, %v608_v34 }
 0x122   : > { %624 = vst.msk [vmem:[%s1949_s26 + $0x3c] sm:$0x1] %vm248_vm7, %v609_v36 }
 0x123   : > { %709 = vst.msk [vmem:[%s1949_s26 + $0x5] sm:$0x1] %vm248_vm7, %v691_v35 }
 0x124   : > { %710 = vst.msk [vmem:[%s1949_s26 + $0xd] sm:$0x1] %vm248_vm7, %v695_v37 }
 0x125   : > { %711 = vst.msk [vmem:[%s1949_s26 + $0x15] sm:$0x1] %vm248_vm7, %v696_v38 }
 0x126   : > { %712 = vst.msk [vmem:[%s1949_s26 + $0x1d] sm:$0x1] %vm248_vm7, %v697_v39 }
 0x127   : > { %713 = vst.msk [vmem:[%s1949_s26 + $0x25] sm:$0x1] %vm248_vm7, %v698_v40 }
 0x128   : > { %714 = vst.msk [vmem:[%s1949_s26 + $0x2d] sm:$0x1] %vm248_vm7, %v699_v41 }
 0x129   : > { %715 = vst.msk [vmem:[%s1949_s26 + $0x35] sm:$0x1] %vm248_vm7, %v700_v42 }
 0x12a   : > { %716 = vst.msk [vmem:[%s1949_s26 + $0x3d] sm:$0x1] %vm248_vm7, %v701_v44 }
 0x12b   : > { %801 = vst.msk [vmem:[%s1949_s26 + $0x6] sm:$0x1] %vm248_vm7, %v783_v43 }
 0x12c   : > { %802 = vst.msk [vmem:[%s1949_s26 + $0xe] sm:$0x1] %vm248_vm7, %v787_v45 }
 0x12d   : > { %803 = vst.msk [vmem:[%s1949_s26 + $0x16] sm:$0x1] %vm248_vm7, %v788_v46 }
 0x12e   : > { %804 = vst.msk [vmem:[%s1949_s26 + $0x1e] sm:$0x1] %vm248_vm7, %v789_v47 }
 0x12f   : > { %805 = vst.msk [vmem:[%s1949_s26 + $0x26] sm:$0x1] %vm248_vm7, %v790_v48 }
 0x130   : > { %806 = vst.msk [vmem:[%s1949_s26 + $0x2e] sm:$0x1] %vm248_vm7, %v791_v49 }
 0x131   : > { %807 = vst.msk [vmem:[%s1949_s26 + $0x36] sm:$0x1] %vm248_vm7, %v792_v50 }
 0x132   : > { %808 = vst.msk [vmem:[%s1949_s26 + $0x3e] sm:$0x1] %vm248_vm7, %v793_v52 }
 0x133   : > { %893 = vst.msk [vmem:[%s1949_s26 + $0x7] sm:$0x1] %vm248_vm7, %v875_v51 }
 0x134   : > { %894 = vst.msk [vmem:[%s1949_s26 + $0xf] sm:$0x1] %vm248_vm7, %v879_v53 }
 0x135   : > { %895 = vst.msk [vmem:[%s1949_s26 + $0x17] sm:$0x1] %vm248_vm7, %v880_v54 }
 0x136   : > { %896 = vst.msk [vmem:[%s1949_s26 + $0x1f] sm:$0x1] %vm248_vm7, %v881_v55 }
 0x137   : > { %897 = vst.msk [vmem:[%s1949_s26 + $0x27] sm:$0x1] %vm248_vm7, %v882_v56 }
 0x138   : > { %898 = vst.msk [vmem:[%s1949_s26 + $0x2f] sm:$0x1] %vm248_vm7, %v883_v57 }
 0x139   : > { %899 = vst.msk [vmem:[%s1949_s26 + $0x37] sm:$0x1] %vm248_vm7, %v884_v58 }
 0x13a   : > { %900 = vst.msk [vmem:[%s1949_s26 + $0x3f] sm:$0x1] %vm248_vm7, %v885_v59 }
 0x13b   : > { %1369 = shalt.err (!%p1366_p7)
}
 0x13c   : > { %s1414_s19 = smov 128   ;;  %s1415_s20 = smov 256  }
 0x13d   : > { %s1416_s21 = smov 8  }
 0x13e   : > { %1254 = dma.vmem_to_hbm [thread:$0]  (%p1465_p5), %s914_s2, 1024, %s916_s30, %s902_s3, %s1414_s19, %s1415_s20, %s1416_s21  }
 0x13f PF: > { %p1266_p8 = scmp.ge.s32.totalorder %s1408_s9, 2  ;;  %s930_s22 = sand.u32 1, %s1396_s6  }
 0x140   : > { %s931_s23 = scalar_lea.sflag [#allocation4], %s930_s22 }
 0x141   : > { %p1261_p9 = pnand %p1266_p8, %p1469_p6 }
 0x143   : > { %p1262_p10 = pneg %p1261_p9 }
 0x145   : > { %1391 = dma.done.wait (%p1262_p10), %s931_s23, 1024  }
 0x146   : > { %1393 = vsyncadd (%p1262_p10), %s931_s23, 4294966272  ;;  %p12_p11 = scmp.ge.s32.totalorder %s1452_s12, 4   ;;  %s2118_s6 = smov %s1400_s7 }
 0x147   : > { %s2119_s7 = smov %s1404_s8  ;;  %s2120_s8 = smov %s1463_s15 }
 0x148   : > { %s2121_s9 = smov %s1452_s12  ;;  %14 = sbr.rel (!%p12_p11) target bundleno = 4 (0x4), region = 61 }
 0x14d   :  { %937 = vsyncpa [#allocation3], 1 }
 0x14e   :  { %939 = vsyncpa [#allocation3 + $0x1], 1 }
 0x14f   :  { %940 = vsyncpa [#allocation4], 1 }
 0x150   :  { %942 = vsyncpa [#allocation4 + $0x1], 1 }

</bundles_post_ra>
